<compile_context>
chip_gen: v7x
topology: tpu7x:2x2x1
jax: 0.10.0
libtpu: 0.0.40
codegen_flags: <defaults>
</compile_context>

<pallas_src>
import functools

import jax
import jax.numpy as jnp
import numpy as np
from jax.experimental import pallas as pl
from jax.experimental.pallas import tpu as pltpu

HIDDEN = 256
LANE = 128


def _round_up(x, m):
    return (x + m - 1) // m * m


def _choose_tile_b(B, max_tile_b):
    """Batch tile: multiple of 16 (bf16 sublane pack), >=2 grid steps when the batch is
    big enough to split (so v7x's 2 TCs both get work), tiles capped at max_tile_b."""
    min_steps = 2 if B > 64 else 1
    steps = max(min_steps, -(-B // max_tile_b))
    return _round_up(-(-B // steps), 16)


def actor_kernel(x_ref, w1_ref, b1_ref, w2_ref, b2_ref, w3_ref, b3_ref, o_ref):
    # One (tb, in_dim) bf16 batch tile per grid step; weights/biases are resident blocks.
    x = x_ref[...]                                               # bf16 MXU operand
    h1 = jnp.dot(x, w1_ref[...], preferred_element_type=jnp.float32) + b1_ref[...]
    h1 = jnp.maximum(h1, 0.0)                                    # ReLU in f32 on VPU
    h2 = jnp.dot(h1.astype(jnp.bfloat16), w2_ref[...],
                 preferred_element_type=jnp.float32) + b2_ref[...]
    h2 = jnp.maximum(h2, 0.0)
    out = jnp.dot(h2.astype(jnp.bfloat16), w3_ref[...],
                  preferred_element_type=jnp.float32) + b3_ref[...]
    o_ref[...] = jnp.tanh(out).astype(o_ref.dtype)               # tanh on EUP (f32), store bf16


def init_actor_params(key, state_size, action_size):
    """f32 params mirroring the PyTorch module's init, stored (in, out) so kernel does x @ W + b.

    fc1/fc2 weights ~ U(-1/sqrt(256), 1/sqrt(256))   (hidden_init uses weight.size()[0] = 256)
    fc3 weights     ~ U(-3e-3, 3e-3)
    biases          ~ U(-1/sqrt(fan_in), 1/sqrt(fan_in))  (PyTorch Linear default)
    """
    in_dim = state_size * 2
    h = HIDDEN
    ks = jax.random.split(key, 6)

    lim12 = 1.0 / np.sqrt(h)
    w1 = jax.random.uniform(ks[0], (in_dim, h), jnp.float32, -lim12, lim12)
    w2 = jax.random.uniform(ks[1], (h, h), jnp.float32, -lim12, lim12)
    w3 = jax.random.uniform(ks[2], (h, action_size), jnp.float32, -3e-3, 3e-3)

    b1 = jax.random.uniform(ks[3], (1, h), jnp.float32,
                            -1.0 / np.sqrt(in_dim), 1.0 / np.sqrt(in_dim))
    b2 = jax.random.uniform(ks[4], (1, h), jnp.float32,
                            -1.0 / np.sqrt(h), 1.0 / np.sqrt(h))
    b3 = jax.random.uniform(ks[5], (1, action_size), jnp.float32,
                            -1.0 / np.sqrt(h), 1.0 / np.sqrt(h))
    return (w1, b1, w2, b2, w3, b3)


def pack_actor_params(params):
    """One-time packing for the kernel: weights -> bf16 (native MXU operand, half the DMA),
    only the *output* feature dim is zero-padded to a lane-dense 128; the tiny input
    feature dim is left unpadded (the MXU zero-pads K internally).  Biases stay f32."""
    w1, b1, w2, b2, w3, b3 = params
    act = w3.shape[1]
    out_pad = max(LANE, _round_up(act, LANE))

    w1p = w1.astype(jnp.bfloat16)                                      # (in_dim, 256)
    w2p = w2.astype(jnp.bfloat16)                                      # (256, 256)
    w3p = jnp.zeros((HIDDEN, out_pad), jnp.bfloat16).at[:, :act].set(w3.astype(jnp.bfloat16))
    b3p = jnp.zeros((1, out_pad), jnp.float32).at[:, :act].set(b3)
    return (w1p, b1, w2p, b2, w3p, b3p)


@functools.partial(jax.jit, static_argnames=("action_size", "max_tile_b"))
def actor_forward(state, packed_params, action_size, max_tile_b=1024):
    """state: (B, state_size*2) f32. Returns (B, action_size) f32."""
    w1, b1, w2, b2, w3, b3 = packed_params
    B, in_dim = state.shape
    hidden = w1.shape[1]
    out_pad = w3.shape[1]

    tb = _choose_tile_b(B, max_tile_b)
    b_pad = _round_up(B, tb)          # at most one tile of slack

    # Single cheap boundary op: cast to bf16 (half the input bytes); pad only the batch
    # dim (no feature pad -> no 8x input-DMA amplification, no extra HBM pass).
    x = state.astype(jnp.bfloat16)
    if b_pad != B:
        x = jnp.pad(x, ((0, b_pad - B), (0, 0)))

    # Advisory cost hint for XLA's scheduler around the custom call.
    flops = 2 * b_pad * (in_dim * hidden + hidden * hidden + hidden * out_pad)
    bytes_accessed = (b_pad * in_dim * 2 + b_pad * out_pad * 2          # bf16 activations I/O
                      + (w1.size + w2.size + w3.size) * 2               # bf16 weights
                      + (b1.size + b2.size + b3.size) * 4)              # f32 biases
    cost = pl.CostEstimate(flops=flops,
                           transcendentals=b_pad * out_pad,
                           bytes_accessed=bytes_accessed)

    const = lambda i: (0, 0)  # weights/biases: fetched once, resident across grid steps
    out = pl.pallas_call(
        actor_kernel,
        out_shape=jax.ShapeDtypeStruct((b_pad, out_pad), jnp.bfloat16),
        grid=(b_pad // tb,),
        in_specs=[
            pl.BlockSpec((tb, in_dim), lambda i: (i, 0)),    # last dim == full array dim
            pl.BlockSpec((in_dim, hidden), const),
            pl.BlockSpec((1, hidden), const),
            pl.BlockSpec((hidden, hidden), const),
            pl.BlockSpec((1, hidden), const),
            pl.BlockSpec((hidden, out_pad), const),
            pl.BlockSpec((1, out_pad), const),
        ],
        out_specs=pl.BlockSpec((tb, out_pad), lambda i: (i, 0)),
        compiler_params=pltpu.CompilerParams(
            dimension_semantics=("parallel",),  # shard batch tiles across v7x's 2 TCs
        ),
        cost_estimate=cost,
    )(x, w1, b1, w2, b2, w3, b3)
    # Padded rows / lanes contain garbage (tanh of bias) -> always sliced off here.
    return out[:B, :action_size].astype(jnp.float32)


def actor_reference(state, params):
    """Pure-f32 reference matching the PyTorch module."""
    w1, b1, w2, b2, w3, b3 = params
    h1 = jnp.maximum(state @ w1 + b1, 0.0)
    h2 = jnp.maximum(h1 @ w2 + b2, 0.0)
    return jnp.tanh(h2 @ w3 + b3)


if __name__ == "__main__":
    key = jax.random.PRNGKey(0)
    state_size = 8           # network input dim = state_size * 2 = 16
    action_size = 4
    batch = 2

    pkey, xkey, xkey2 = jax.random.split(key, 3)
    params = init_actor_params(pkey, state_size, action_size)
    packed = pack_actor_params(params)

    # Small-batch path (single grid step, batch padded to one 16-row tile).
    state = jax.random.normal(xkey, (batch, state_size * 2), jnp.float32)
    out = actor_forward(state, packed, action_size)
    jax.block_until_ready(out)
    ref = actor_reference(state, params)
    # bf16 activation I/O + bf16 MXU operands with f32 accumulation -> loose tolerance.
    np.testing.assert_allclose(np.asarray(out), np.asarray(ref), rtol=2e-2, atol=2e-2)
    assert out.shape == (batch, action_size)

    # Larger batch exercises the multi-step batch grid (2 tiles of 320 rows) + slicing path.
    big_batch = 640
    state_big = jax.random.normal(xkey2, (big_batch, state_size * 2), jnp.float32)
    out_big = actor_forward(state_big, packed, action_size)
    jax.block_until_ready(out_big)
    ref_big = actor_reference(state_big, params)
    np.testing.assert_allclose(np.asarray(out_big), np.asarray(ref_big), rtol=2e-2, atol=2e-2)
    assert out_big.shape == (big_batch, action_size)

    print("KERNEL_OK")
</pallas_src>

<mosaic_0001>
module attributes {stable_mosaic.version = 11 : i64} {
  func.func @actor_kernel(%arg0: i32, %arg1: memref<16x16xbf16, #tpu.memory_space<vmem>>, %arg2: memref<16x256xbf16, #tpu.memory_space<vmem>>, %arg3: memref<1x256xf32, #tpu.memory_space<vmem>>, %arg4: memref<256x256xbf16, #tpu.memory_space<vmem>>, %arg5: memref<1x256xf32, #tpu.memory_space<vmem>>, %arg6: memref<256x128xbf16, #tpu.memory_space<vmem>>, %arg7: memref<1x128xf32, #tpu.memory_space<vmem>>, %arg8: memref<16x128xbf16, #tpu.memory_space<vmem>>) attributes {dimension_semantics = [#tpu.dimension_semantics<parallel>], iteration_bounds = array<i64: 1>, scalar_prefetch = 0 : i64, scratch_operands = 0 : i64, tpu.core_type = #tpu.core_type<tc>, window_params = [{transform_indices = @transform_0, window_bounds = array<i64: 16, 16>}, {pipeline_mode = #tpu.pipeline_mode<synchronous>, transform_indices = @transform_1, window_bounds = array<i64: 16, 256>}, {pipeline_mode = #tpu.pipeline_mode<synchronous>, transform_indices = @transform_2, window_bounds = array<i64: 1, 256>}, {pipeline_mode = #tpu.pipeline_mode<synchronous>, transform_indices = @transform_3, window_bounds = array<i64: 256, 256>}, {pipeline_mode = #tpu.pipeline_mode<synchronous>, transform_indices = @transform_4, window_bounds = array<i64: 1, 256>}, {pipeline_mode = #tpu.pipeline_mode<synchronous>, transform_indices = @transform_5, window_bounds = array<i64: 256, 128>}, {pipeline_mode = #tpu.pipeline_mode<synchronous>, transform_indices = @transform_6, window_bounds = array<i64: 1, 128>}, {transform_indices = @transform_7, window_bounds = array<i64: 16, 128>}]} {
    %c0 = arith.constant 0 : index
    %c0_0 = arith.constant 0 : index
    %0 = vector.load %arg1[%c0, %c0_0] : memref<16x16xbf16, #tpu.memory_space<vmem>>, vector<16x16xbf16>
    %c0_1 = arith.constant 0 : index
    %c0_2 = arith.constant 0 : index
    %1 = vector.load %arg2[%c0_1, %c0_2] : memref<16x256xbf16, #tpu.memory_space<vmem>>, vector<16x256xbf16>
    %cst = arith.constant dense<0.000000e+00> : vector<16x256xf32>
    %2 = tpu.matmul %0, %1, %cst {dimension_numbers = #tpu.dot_dimension_numbers<[1], [0], [0], [1], [0, 0, 1, 1], [], []>} : vector<16x16xbf16>, vector<16x256xbf16>, vector<16x256xf32> -> vector<16x256xf32>
    %c0_3 = arith.constant 0 : index
    %c0_4 = arith.constant 0 : index
    %3 = vector.load %arg3[%c0_3, %c0_4] : memref<1x256xf32, #tpu.memory_space<vmem>>, vector<1x256xf32>
    %4 = vector.broadcast %3 : vector<1x256xf32> to vector<16x256xf32>
    %5 = arith.addf %2, %4 : vector<16x256xf32>
    %cst_5 = arith.constant 0.000000e+00 : f32
    %6 = vector.broadcast %cst_5 : f32 to vector<16x256xf32>
    %7 = arith.maximumf %5, %6 : vector<16x256xf32>
    %8 = arith.truncf %7 : vector<16x256xf32> to vector<16x256xbf16>
    %c0_6 = arith.constant 0 : index
    %c0_7 = arith.constant 0 : index
    %9 = vector.load %arg4[%c0_6, %c0_7] : memref<256x256xbf16, #tpu.memory_space<vmem>>, vector<256x256xbf16>
    %cst_8 = arith.constant dense<0.000000e+00> : vector<16x256xf32>
    %10 = tpu.matmul %8, %9, %cst_8 {dimension_numbers = #tpu.dot_dimension_numbers<[1], [0], [0], [1], [0, 0, 1, 1], [], []>} : vector<16x256xbf16>, vector<256x256xbf16>, vector<16x256xf32> -> vector<16x256xf32>
    %c0_9 = arith.constant 0 : index
    %c0_10 = arith.constant 0 : index
    %11 = vector.load %arg5[%c0_9, %c0_10] : memref<1x256xf32, #tpu.memory_space<vmem>>, vector<1x256xf32>
    %12 = vector.broadcast %11 : vector<1x256xf32> to vector<16x256xf32>
    %13 = arith.addf %10, %12 : vector<16x256xf32>
    %cst_11 = arith.constant 0.000000e+00 : f32
    %14 = vector.broadcast %cst_11 : f32 to vector<16x256xf32>
    %15 = arith.maximumf %13, %14 : vector<16x256xf32>
    %16 = arith.truncf %15 : vector<16x256xf32> to vector<16x256xbf16>
    %c0_12 = arith.constant 0 : index
    %c0_13 = arith.constant 0 : index
    %17 = vector.load %arg6[%c0_12, %c0_13] : memref<256x128xbf16, #tpu.memory_space<vmem>>, vector<256x128xbf16>
    %cst_14 = arith.constant dense<0.000000e+00> : vector<16x128xf32>
    %18 = tpu.matmul %16, %17, %cst_14 {dimension_numbers = #tpu.dot_dimension_numbers<[1], [0], [0], [1], [0, 0, 1, 1], [], []>} : vector<16x256xbf16>, vector<256x128xbf16>, vector<16x128xf32> -> vector<16x128xf32>
    %c0_15 = arith.constant 0 : index
    %c0_16 = arith.constant 0 : index
    %19 = vector.load %arg7[%c0_15, %c0_16] : memref<1x128xf32, #tpu.memory_space<vmem>>, vector<1x128xf32>
    %20 = vector.broadcast %19 : vector<1x128xf32> to vector<16x128xf32>
    %21 = arith.addf %18, %20 : vector<16x128xf32>
    %22 = math.tanh %21 : vector<16x128xf32>
    %23 = arith.truncf %22 : vector<16x128xf32> to vector<16x128xbf16>
    %c0_17 = arith.constant 0 : index
    %c0_18 = arith.constant 0 : index
    %24 = vector.load %arg8[%c0_17, %c0_18] : memref<16x128xbf16, #tpu.memory_space<vmem>>, vector<16x128xbf16>
    tpu.vector_store %arg8[%c0_17, %c0_18], %23 {strides = array<i32>} : memref<16x128xbf16, #tpu.memory_space<vmem>>, vector<16x128xbf16>,
    return
  }
  func.func @transform_0(%arg0: i32) -> (i32, i32) {
    %c0_i32 = arith.constant 0 : i32
    %c0_i32_0 = arith.constant 0 : i32
    return %arg0, %c0_i32 : i32, i32
  }
  func.func @transform_1(%arg0: i32) -> (i32, i32) {
    %c0_i32 = arith.constant 0 : i32
    %c0_i32_0 = arith.constant 0 : i32
    %c0_i32_1 = arith.constant 0 : i32
    return %c0_i32, %c0_i32_0 : i32, i32
  }
  func.func @transform_2(%arg0: i32) -> (i32, i32) {
    %c0_i32 = arith.constant 0 : i32
    %c0_i32_0 = arith.constant 0 : i32
    %c0_i32_1 = arith.constant 0 : i32
    return %c0_i32, %c0_i32_0 : i32, i32
  }
  func.func @transform_3(%arg0: i32) -> (i32, i32) {
    %c0_i32 = arith.constant 0 : i32
    %c0_i32_0 = arith.constant 0 : i32
    %c0_i32_1 = arith.constant 0 : i32
    return %c0_i32, %c0_i32_0 : i32, i32
  }
  func.func @transform_4(%arg0: i32) -> (i32, i32) {
    %c0_i32 = arith.constant 0 : i32
    %c0_i32_0 = arith.constant 0 : i32
    %c0_i32_1 = arith.constant 0 : i32
    return %c0_i32, %c0_i32_0 : i32, i32
  }
  func.func @transform_5(%arg0: i32) -> (i32, i32) {
    %c0_i32 = arith.constant 0 : i32
    %c0_i32_0 = arith.constant 0 : i32
    %c0_i32_1 = arith.constant 0 : i32
    return %c0_i32, %c0_i32_0 : i32, i32
  }
  func.func @transform_6(%arg0: i32) -> (i32, i32) {
    %c0_i32 = arith.constant 0 : i32
    %c0_i32_0 = arith.constant 0 : i32
    %c0_i32_1 = arith.constant 0 : i32
    return %c0_i32, %c0_i32_0 : i32, i32
  }
  func.func @transform_7(%arg0: i32) -> (i32, i32) {
    %c0_i32 = arith.constant 0 : i32
    %c0_i32_0 = arith.constant 0 : i32
    return %arg0, %c0_i32 : i32, i32
  }
}

</mosaic_0001>

<bundles_post_ra>
// kernel: actor_forward.1
= control target key start
LH: loop header
LB: loop body
LE: loop exit
PB: predicated region body
PF: predicated region fallthrough
CT: control target
= control target key end

     0   :  { %12 = vsyncpa [#allocation3], 0  ;;  %s889_s0 = inlined_call_operand.vmem [shape: bf16[16,16], index: 0, kind: input, shape index: {}]   ;;  %s890_s1 = inlined_call_operand.vmem [shape: bf16[16,256], index: 1, kind: input, shape index: {}]   ;;  %s891_s2 = inlined_call_operand.vmem [shape: f32[1,256], index: 2, kind: input, shape index: {}]   ;;  %s892_s3 = inlined_call_operand.hbm [shape: bf16[256,256], index: 3, kind: input, shape index: {}]   ;;  %s893_s4 = inlined_call_operand.vmem [shape: f32[1,256], index: 4, kind: input, shape index: {}]   ;;  %s894_s5 = inlined_call_operand.hbm [shape: bf16[256,128], index: 5, kind: input, shape index: {}]   ;;  %s895_s6 = inlined_call_operand.vmem [shape: f32[1,128], index: 6, kind: input, shape index: {}]   ;;  %s896_s7 = inlined_call_operand.vmem [shape: bf16[16,128], index: 7, kind: output, shape index: {}]  }
   0x1   :  { %13 = vsyncpa [#allocation5], 0  ;;  %s797_s24 = smov [#allocation2]   ;;  %s749_s28 = scalar_lea.hbm %s892_s3, 4096 }
   0x2   :  { %s25_s25 = sshll.u32 %s797_s24, 4  ;;  %p750_p0 = scmp.ne.s32.totalorder %s892_s3, %s749_s28  ;;  %s26_s25 = int_to_ptr.vmem [resolvable:$true] %s25_s25 }
   0x3   :  { %p753_p1 = scmp.lt.u32.totalorder %s749_s28, %s892_s3 }
   0x5   :  { %p755_p2 = pnand %p753_p1, %p750_p0 }
   0x7   :  { %758 = shalt.err (!%p755_p2)
}
   0x8   :  { %s759_s10 = scalar_lea.vmem %s26_s25, 4096  ;;  %p764_p4 = scmp.lt.s32.totalorder %s26_s25, %s26_s25 }
   0x9   :  { %p760_p3 = scmp.ne.s32.totalorder %s26_s25, %s759_s10  ;;  %p765_p5 = scmp.lt.s32.totalorder %s759_s10, %s759_s10 }
   0xb   :  { %p766_p6 = por %p765_p5, %p764_p4 }
   0xd   :  { %p767_p7 = pnand %p766_p6, %p760_p3 }
   0xf   :  { %770 = shalt.err (!%p767_p7)
}
  0x10   :  { %s798_s11 = smov 128   ;;  %s799_s12 = smov 8  }
  0x11   :  { %31 = dma.hbm_to_vmem [thread:$0]  %s892_s3, 4096, %s26_s25, [#allocation3], %s798_s11, %s798_s11, %s799_s12  }
  0x12   :  { %s800_s15 = smov [#allocation4]   ;;  %s771_s19 = scalar_lea.hbm %s894_s5, 2048 }
  0x13   :  { %s39_s16 = sshll.u32 %s800_s15, 4  ;;  %p772_p8 = scmp.ne.s32.totalorder %s894_s5, %s771_s19  ;;  %s40_s16 = int_to_ptr.vmem [resolvable:$true] %s39_s16 }
  0x14   :  { %p775_p9 = scmp.lt.u32.totalorder %s771_s19, %s894_s5 }
  0x16   :  { %p777_p10 = pnand %p775_p9, %p772_p8 }
  0x18   :  { %780 = shalt.err (!%p777_p10)
}
  0x19   :  { %s781_s24 = scalar_lea.vmem %s40_s16, 2048  ;;  %p786_p12 = scmp.lt.s32.totalorder %s40_s16, %s40_s16 }
  0x1a   :  { %p782_p11 = scmp.ne.s32.totalorder %s40_s16, %s781_s24  ;;  %p787_p13 = scmp.lt.s32.totalorder %s781_s24, %s781_s24 }
  0x1c   :  { %p788_p0 = por %p787_p13, %p786_p12 }
  0x1e   :  { %p789_p1 = pnand %p788_p0, %p782_p11 }
  0x20   :  { %792 = shalt.err (!%p789_p1)
}
  0x21   :  { %s801_s3 = smov 64   ;;  %s802_s25 = smov 4  }
  0x22   :  { %45 = dma.hbm_to_vmem [thread:$0]  %s894_s5, 2048, %s40_s16, [#allocation5], %s801_s3, %s801_s3, %s802_s25  }
  0x23   :  { %793 = dma.done.wait [#allocation3], 4096  }
  0x24   :  { %794 = vsyncadd [#allocation3], 4294963200 }
  0x25   :  { %795 = dma.done.wait [#allocation5], 2048  }
  0x26   :  { %796 = vsyncadd [#allocation5], 4294965248  ;;  %v803_v0 = vmov 0   ;;  %v677_v1 = vld [vmem:[%s890_s1 + $0x4] ss:$8 sps:$4 sm:$0xff]   ;;  %vm86_vm0 = vcmask 130048   ;;  %v61_v47 = vlaneseq }
  0x27   :  { %122 = vmatprep.mubr.bf16.mxu0 %v803_v0  ;;  %v679_v2 = vld [vmem:[%s890_s1] ss:$8 sps:$4 sm:$0xff]   ;;  %90 = vmatprep.subr.bf16.mxu0 %v677_v1  ;;  %v681_v4 = vld [vmem:[#allocation2 + $0x4] ss:$8 sps:$4 sm:$0xff]   ;;  %v684_v6 = vld [vmem:[#allocation2 + $0x14] ss:$8 sps:$4 sm:$0xff]  }
  0x28   :  { %v680_v3 = vld [vmem:[%s889_s0] sm:$0xff]   ;;  %91 = vmatpush1.bf16.msra.mxu0 %v679_v2  ;;  %343 = vmatprep.subr.bf16.mxu1 %v681_v4  ;;  %v686_v7 = vld [vmem:[#allocation2 + $0x10] ss:$8 sps:$4 sm:$0xff]   ;;  %v690_v10 = vld [vmem:[#allocation2 + $0x34] ss:$8 sps:$4 sm:$0xff]   ;;  %v62_v48 = vshrl.u32 %v61_v47, 7 }
  0x29   :  { %v683_v5 = vld [vmem:[#allocation2] ss:$8 sps:$4 sm:$0xff]   ;;  %v687_v8 = vld [vmem:[#allocation2 + $0x24] ss:$8 sps:$4 sm:$0xff]   ;;  %v692_v11 = vld [vmem:[#allocation2 + $0x30] ss:$8 sps:$4 sm:$0xff]  }
  0x2a   :  { %344 = vmatpush1.bf16.msra.mxu1 %v683_v5  ;;  %v689_v9 = vld [vmem:[#allocation2 + $0x20] ss:$8 sps:$4 sm:$0xff]   ;;  %v693_v12 = vld [vmem:[#allocation2 + $0x44] ss:$8 sps:$4 sm:$0xff]   ;;  %v696_v14 = vld [vmem:[#allocation2 + $0x54] ss:$8 sps:$4 sm:$0xff]  }
  0x2b   :  { %589 = vmatmul.mubr.msk.bf16.vlgmr.msra.gmra.mrb[0].mxu0 %vm86_vm0, %v680_v3  ;;  %345 = vmatprep.subr.bf16.mxu1 %v684_v6  ;;  %v695_v13 = vld [vmem:[#allocation2 + $0x40] ss:$8 sps:$4 sm:$0xff]   ;;  %v698_v15 = vld [vmem:[#allocation2 + $0x50] ss:$8 sps:$4 sm:$0xff]   ;;  %v699_v16 = vld [vmem:[#allocation2 + $0x64] ss:$8 sps:$4 sm:$0xff]  }
  0x2c   :  { %v701_v17 = vld [vmem:[#allocation2 + $0x60] ss:$8 sps:$4 sm:$0xff]   ;;  %v702_v18 = vld [vmem:[#allocation2 + $0x74] ss:$8 sps:$4 sm:$0xff]   ;;  %v704_v19 = vld [vmem:[#allocation2 + $0x70] ss:$8 sps:$4 sm:$0xff]  }
  0x2d   :  { %v705_v20 = vld [vmem:[#allocation2 + $0x84] ss:$8 sps:$4 sm:$0xff]   ;;  %v707_v21 = vld [vmem:[#allocation2 + $0x80] ss:$8 sps:$4 sm:$0xff]   ;;  %v708_v22 = vld [vmem:[#allocation2 + $0x94] ss:$8 sps:$4 sm:$0xff]  }
  0x2e   :  { %346 = vmatpush1.bf16.msra.mxu1 %v686_v7  ;;  %v710_v23 = vld [vmem:[#allocation2 + $0x90] ss:$8 sps:$4 sm:$0xff]   ;;  %v711_v24 = vld [vmem:[#allocation2 + $0xa4] ss:$8 sps:$4 sm:$0xff]   ;;  %v713_v25 = vld [vmem:[#allocation2 + $0xa0] ss:$8 sps:$4 sm:$0xff]  }
  0x2f   :  { %347 = vmatprep.subr.bf16.mxu1 %v687_v8  ;;  %v714_v26 = vld [vmem:[#allocation2 + $0xb4] ss:$8 sps:$4 sm:$0xff]   ;;  %v716_v27 = vld [vmem:[#allocation2 + $0xb0] ss:$8 sps:$4 sm:$0xff]   ;;  %v717_v28 = vld [vmem:[#allocation2 + $0xc4] ss:$8 sps:$4 sm:$0xff]  }
  0x30   :  { %v719_v29 = vld [vmem:[#allocation2 + $0xc0] ss:$8 sps:$4 sm:$0xff]   ;;  %v720_v30 = vld [vmem:[#allocation2 + $0xd4] ss:$8 sps:$4 sm:$0xff]   ;;  %v722_v31 = vld [vmem:[#allocation2 + $0xd0] ss:$8 sps:$4 sm:$0xff]  }
  0x31   :  { %v723_v32 = vld [vmem:[#allocation2 + $0xe4] ss:$8 sps:$4 sm:$0xff]   ;;  %v725_v33 = vld [vmem:[#allocation2 + $0xe0] ss:$8 sps:$4 sm:$0xff]   ;;  %v726_v34 = vld [vmem:[#allocation2 + $0xf4] ss:$8 sps:$4 sm:$0xff]  }
  0x32   :  { %348 = vmatpush1.bf16.msra.mxu1 %v689_v9  ;;  %v728_v35 = vld [vmem:[#allocation2 + $0xf0] ss:$8 sps:$4 sm:$0xff]   ;;  %v729_v36 = vld [vmem:[#allocation4 + $0x40] sm:$0xff]   ;;  %v731_v38 = vld [vmem:[#allocation4 + $0x48] sm:$0xff]   ;;  %v63_v49 = vsub.s32 0, %v62_v48  ;;  %v67_v51 = vsub.s32 1, %v62_v48 }
  0x33   :  { %349 = vmatprep.subr.bf16.mxu1 %v690_v10  ;;  %v730_v37 = vld [vmem:[#allocation4] sm:$0xff]   ;;  %648 = vmatprep.subr.bf16.mxu0 %v729_v36  ;;  %v732_v39 = vld [vmem:[#allocation4 + $0x8] sm:$0xff]   ;;  %v733_v40 = vld [vmem:[#allocation4 + $0x50] sm:$0xff]  }
  0x34   :  { %649 = vmatpush3.bf16.msra.mxu0 %v730_v37  ;;  %v734_v41 = vld [vmem:[#allocation4 + $0x10] sm:$0xff]   ;;  %v735_v42 = vld [vmem:[#allocation4 + $0x58] sm:$0xff]   ;;  %v737_v44 = vld [vmem:[#allocation4 + $0x60] sm:$0xff]  }
  0x35   :  { %650 = vmatprep.subr.bf16.mxu0 %v731_v38  ;;  %v736_v43 = vld [vmem:[#allocation4 + $0x18] sm:$0xff]   ;;  %v738_v45 = vld [vmem:[#allocation4 + $0x20] sm:$0xff]   ;;  %v739_v46 = vld [vmem:[#allocation4 + $0x68] sm:$0xff]  }
  0x36   :  { %350 = vmatpush1.bf16.msra.mxu1 %v692_v11  ;;  %v59_v50 = vld [vmem:[%s891_s2] sm:$0x3]  ;;  %v740_v4 = vld [vmem:[#allocation4 + $0x28] sm:$0xff]   ;;  %v741_v5 = vld [vmem:[#allocation4 + $0x70] sm:$0xff]  }
  0x37   :  { %351 = vmatprep.subr.bf16.mxu1 %v693_v12  ;;  %v64_v52 = vrot.slane %v59_v50, %v63_v49  ;;  %v68_v53 = vrot.slane %v59_v50, %v67_v51  ;;  %v742_v6 = vld [vmem:[#allocation4 + $0x30] sm:$0xff]   ;;  %v743_v7 = vld [vmem:[#allocation4 + $0x78] sm:$0xff]   ;;  %v171_v9 = vld [vmem:[%s893_s4] sm:$0x3] }
  0x38   :  { %651 = vmatpush3.bf16.msra.mxu0 %v732_v39  ;;  %v744_v8 = vld [vmem:[#allocation4 + $0x38] sm:$0xff]   ;;  %v176_v10 = vrot.slane %v171_v9, %v63_v49  ;;  %v180_v11 = vrot.slane %v171_v9, %v67_v51 }
  0x39   :  { %652 = vmatprep.subr.bf16.mxu0 %v733_v40 }
  0x3a   :  { %352 = vmatpush1.bf16.msra.mxu1 %v695_v13 }
  0x3b   :  { %353 = vmatprep.subr.bf16.mxu1 %v696_v14 }
  0x3c   :  { %653 = vmatpush3.bf16.msra.mxu0 %v734_v41 }
  0x3d   :  { %654 = vmatprep.subr.bf16.mxu0 %v735_v42 }
  0x3e   :  { %354 = vmatpush1.bf16.msra.mxu1 %v698_v15 }
  0x3f   :  { %355 = vmatprep.subr.bf16.mxu1 %v699_v16 }
  0x40   :  { %655 = vmatpush3.bf16.msra.mxu0 %v736_v43 }
  0x41   :  { %656 = vmatprep.subr.bf16.mxu0 %v737_v44 }
  0x42   :  { %356 = vmatpush1.bf16.msra.mxu1 %v701_v17 }
  0x43   :  { %357 = vmatprep.subr.bf16.mxu1 %v702_v18 }
  0x44   :  { %657 = vmatpush3.bf16.msra.mxu0 %v738_v45 }
  0x45   :  { %658 = vmatprep.subr.bf16.mxu0 %v739_v46 }
  0x46   :  { %358 = vmatpush1.bf16.msra.mxu1 %v704_v19 }
  0x47   :  { %359 = vmatprep.subr.bf16.mxu1 %v705_v20 }
  0x48   :  { %659 = vmatpush3.bf16.msra.mxu0 %v740_v4 }
  0x49   :  { %660 = vmatprep.subr.bf16.mxu0 %v741_v5 }
  0x4a   :  { %360 = vmatpush1.bf16.msra.mxu1 %v707_v21 }
  0x4b   :  { %361 = vmatprep.subr.bf16.mxu1 %v708_v22 }
  0x4c   :  { %661 = vmatpush3.bf16.msra.mxu0 %v742_v6 }
  0x4d   :  { %662 = vmatprep.subr.bf16.mxu0 %v743_v7 }
  0x4e   :  { %362 = vmatpush1.bf16.msra.mxu1 %v710_v23 }
  0x4f   :  { %363 = vmatprep.subr.bf16.mxu1 %v711_v24 }
  0x50   :  { %663 = vmatpush3.bf16.msra.mxu0 %v744_v8 }
  0x52   :  { %364 = vmatpush1.bf16.msra.mxu1 %v713_v25 }
  0x53   :  { %365 = vmatprep.subr.bf16.mxu1 %v714_v26 }
  0x56   :  { %366 = vmatpush1.bf16.msra.mxu1 %v716_v27  ;;  %v622_v27 = vld [vmem:[%s895_s6] ss:$0 sm:$0xff] }
  0x57   :  { %367 = vmatprep.subr.bf16.mxu1 %v717_v28 }
  0x5a   :  { %368 = vmatpush1.bf16.msra.mxu1 %v719_v29 }
  0x5b   :  { %369 = vmatprep.subr.bf16.mxu1 %v720_v30 }
  0x5e   :  { %370 = vmatpush1.bf16.msra.mxu1 %v722_v31 }
  0x5f   :  { %371 = vmatprep.subr.bf16.mxu1 %v723_v32 }
  0x62   :  { %372 = vmatpush1.bf16.msra.mxu1 %v725_v33 }
  0x63   :  { %373 = vmatprep.subr.bf16.mxu1 %v726_v34 }
  0x66   :  { %374 = vmatpush1.bf16.msra.mxu1 %v728_v35 }
  0xfe   :  { %v124_v54 = vpop.f32.mrb[0].mxu0 }
  0xff   :  { %v125_v55 = vadd.f32 %v124_v54, %v64_v52  ;;  %v126_v56 = vpop.f32.mrb[1].mxu0 }
 0x100   :  { %v127_v57 = vadd.f32 %v126_v56, %v68_v53  ;;  %v128_v58 = vpop.f32.mrb[2].mxu0 }
 0x101   :  { %v129_v59 = vadd.f32 %v128_v58, %v64_v52  ;;  %v130_v60 = vpop.f32.mrb[3].mxu0  ;;  %v133_v62 = vmax.f32 %v125_v55, 0.0 }
 0x102   :  { %v131_v61 = vadd.f32 %v130_v60, %v68_v53  ;;  %v134_v0 = vmax.f32 %v127_v57, 0.0 }
 0x103   :  { %v135_v63 = vmax.f32 %v129_v59, 0.0 }
 0x104   :  { %v136_v1 = vmax.f32 %v131_v61, 0.0 }
 0x105   :  { %v137_v2 = vpack.c.bf16 %v135_v63, %v133_v62 }
 0x106   :  { %v138_v3 = vpack.c.bf16 %v136_v1, %v134_v0 }
 0x108   :  { %375 = vmatprep.mubr.bf16.mxu1 %v138_v3 }
 0x109   :  { %376 = vmatmul.mubr.bf16.vlgmr.msra.gmra.mrb[0].mxu1 %v137_v2 }
 0x1dc   :  { %v377_v12 = vpop.f32.mrb[0].mxu1 }
 0x1dd   :  { %v378_v13 = vadd.f32 %v377_v12, %v176_v10  ;;  %v379_v14 = vpop.f32.mrb[1].mxu1 }
 0x1de   :  { %v380_v15 = vadd.f32 %v379_v14, %v180_v11  ;;  %v381_v16 = vpop.f32.mrb[2].mxu1 }
 0x1df   :  { %v382_v17 = vadd.f32 %v381_v16, %v176_v10  ;;  %v383_v18 = vpop.f32.mrb[3].mxu1  ;;  %v386_v20 = vmax.f32 %v378_v13, 0.0 }
 0x1e0   :  { %v384_v19 = vadd.f32 %v383_v18, %v180_v11  ;;  %v387_v22 = vmax.f32 %v380_v15, 0.0 }
 0x1e1   :  { %v388_v21 = vmax.f32 %v382_v17, 0.0 }
 0x1e2   :  { %v389_v23 = vmax.f32 %v384_v19, 0.0 }
 0x1e3   :  { %v390_v24 = vpack.c.bf16 %v388_v21, %v386_v20 }
 0x1e4   :  { %v391_v25 = vpack.c.bf16 %v389_v23, %v387_v22 }
 0x1e6   :  { %559 = vmatprep.mubr.bf16.mxu0 %v391_v25 }
 0x1e7   :  { %560 = vmatmul.mubr.bf16.vlgmr.msra.gmra.mrb[4].mxu0 %v390_v24 }
 0x2ba   :  { %v664_v26 = vpop.f32.mrb[4].mxu0 }
 0x2bb   :  { %v665_v28 = vpop.f32.mrb[5].mxu0 }
 0x2bc   :  { %v666_v29 = vadd.f32 %v665_v28, %v664_v26  ;;  %v667_v30 = vpop.f32.mrb[6].mxu0 }
 0x2bd   :  { %v668_v31 = vpop.f32.mrb[7].mxu0 }
 0x2be   :  { %v562_v32 = vadd.f32 %v666_v29, %v622_v27  ;;  %v669_v33 = vadd.f32 %v668_v31, %v667_v30 }
 0x2c0   :  { %v565_v34 = vadd.f32 %v669_v33, %v622_v27  ;;  %745 = vtanh.f32 %v562_v32 }
 0x2c2   :  { %747 = vtanh.f32 %v565_v34 }
 0x2ca   :  { %v746_v35 = vpop.eup %745 }
 0x2cc   :  { %v748_v36 = vpop.eup %747 }
 0x2cd   :  { %v646_v37 = vpack.c.bf16 %v748_v36, %v746_v35 }
 0x2cf   :  { %647 = vst [vmem:[%s896_s7] sm:$0xff] %v646_v37  }
 0x2d0   :  { %584 = vsyncpa [#allocation3], 1 }
 0x2d1   :  { %585 = vsyncpa [#allocation5], 1 }

</bundles_post_ra>
